<compile_context>
chip_gen: v7x
topology: tpu7x:2x2x1
jax: 0.10.0
libtpu: 0.0.40
codegen_flags: <defaults>
</compile_context>

<pallas_src>
import functools

import jax
import jax.numpy as jnp
from jax import lax
from jax.experimental import pallas as pl
from jax.experimental.pallas import tpu as pltpu


def _round_up(a, b):
    return (a + b - 1) // b * b


def _gct_reduce_kernel(x_ref, ssq_ref):
    # ssq[0, hw] = sum over all (b, c) rows of x[row, hw]^2, accumulated
    # across grid steps in a VMEM-resident output block.
    @pl.when(pl.program_id(0) == 0)
    def _init():
        ssq_ref[...] = jnp.zeros_like(ssq_ref)

    xb = x_ref[...].astype(jnp.float32)
    ssq_ref[...] += jnp.sum(xb * xb, axis=0, keepdims=True)


def _gct_apply_kernel(x_ref, ssq_ref, alpha_ref, gamma_ref, beta_ref, ma2_ref,
                      out_ref, *, epsilon):
    x = x_ref[...].astype(jnp.float32)               # [TR, HW]
    ma2 = ma2_ref[0, 0]                              # scalar: mean_c(alpha^2)

    s2 = ssq_ref[...] + epsilon                      # [1, HW]
    s = jnp.sqrt(s2)                                 # embedding / alpha
    inv = lax.rsqrt(s2 * ma2 + epsilon)              # 1/sqrt(mean_c emb^2 + eps)

    ag = alpha_ref[...] * gamma_ref[...]             # [TR, 1]
    gate = 1.0 + jnp.tanh(ag * (s * inv) + beta_ref[...])   # [TR, HW]
    out_ref[...] = (x * gate).astype(out_ref.dtype)


def gct_forward(x, alpha, gamma, beta, *, epsilon=1e-5, mode="l2",
                after_relu=False, row_tile=None):
    """Pallas implementation of GCT.forward (mode='l2', the module default)."""
    if mode != "l2":
        # TODO(synk): mode='l1' branch not implemented; 'l2' is the default.
        raise NotImplementedError("only mode='l2' is implemented")
    del after_relu  # only relevant for mode='l1'

    B, C, H, W = x.shape
    HW = H * W
    R = B * C
    itemsize = x.dtype.itemsize

    # [B, C, H, W] -> [B*C, H*W]: reduction rows on sublanes, spatial on lanes.
    x2d = x.reshape(R, HW)
    a_row = jnp.broadcast_to(alpha.reshape(1, C), (B, C)).reshape(R, 1)
    g_row = jnp.broadcast_to(gamma.reshape(1, C), (B, C)).reshape(R, 1)
    b_row = jnp.broadcast_to(beta.reshape(1, C), (B, C)).reshape(R, 1)
    a_row = a_row.astype(jnp.float32)
    g_row = g_row.astype(jnp.float32)
    b_row = b_row.astype(jnp.float32)
    ma2 = jnp.mean(alpha.reshape(C).astype(jnp.float32) ** 2).reshape(1, 1)

    # Row tile: multiple of 8, ~2 MiB per x block (fits default scoped VMEM
    # with double buffering on every TPU generation).
    if row_tile is None:
        row_tile = max(8, (2 * 1024 * 1024) // max(1, HW * itemsize))
    tr = max(8, (int(row_tile) // 8) * 8)
    tr = min(tr, _round_up(R, 8))
    r_pad = _round_up(R, tr)
    n_tiles = r_pad // tr

    if r_pad != R:
        pad = r_pad - R
        x2d = jnp.pad(x2d, ((0, pad), (0, 0)))   # zero rows: no effect on ssq
        a_row = jnp.pad(a_row, ((0, pad), (0, 0)))
        g_row = jnp.pad(g_row, ((0, pad), (0, 0)))
        b_row = jnp.pad(b_row, ((0, pad), (0, 0)))

    # Pass 1: ssq = sum_{b,c} x^2 (resident accumulator across the grid).
    ssq = pl.pallas_call(
        _gct_reduce_kernel,
        out_shape=jax.ShapeDtypeStruct((1, HW), jnp.float32),
        grid=(n_tiles,),
        in_specs=[pl.BlockSpec((tr, HW), lambda i: (i, 0))],
        out_specs=pl.BlockSpec((1, HW), lambda i: (0, 0)),
        compiler_params=pltpu.CompilerParams(
            dimension_semantics=("arbitrary",)),
        cost_estimate=pl.CostEstimate(
            flops=2 * r_pad * HW,
            transcendentals=0,
            bytes_accessed=r_pad * HW * itemsize + HW * 4),
    )(x2d)

    # Pass 2: out = x * (1 + tanh(alpha*gamma * s * rsqrt(s2*ma2+eps) + beta)).
    out2d = pl.pallas_call(
        functools.partial(_gct_apply_kernel, epsilon=float(epsilon)),
        out_shape=jax.ShapeDtypeStruct((r_pad, HW), x.dtype),
        grid=(n_tiles,),
        in_specs=[
            pl.BlockSpec((tr, HW), lambda i: (i, 0)),   # x tile
            pl.BlockSpec((1, HW), lambda i: (0, 0)),    # ssq (VMEM-resident)
            pl.BlockSpec((tr, 1), lambda i: (i, 0)),    # alpha per row
            pl.BlockSpec((tr, 1), lambda i: (i, 0)),    # gamma per row
            pl.BlockSpec((tr, 1), lambda i: (i, 0)),    # beta per row
            pl.BlockSpec(memory_space=pltpu.MemorySpace.SMEM),  # mean(alpha^2)
        ],
        out_specs=pl.BlockSpec((tr, HW), lambda i: (i, 0)),
        compiler_params=pltpu.CompilerParams(
            dimension_semantics=("parallel",)),
        cost_estimate=pl.CostEstimate(
            flops=8 * r_pad * HW,
            transcendentals=2 * r_pad * HW,
            bytes_accessed=2 * r_pad * HW * itemsize),
    )(x2d, ssq, a_row, g_row, b_row, ma2)

    return out2d[:R].reshape(B, C, H, W)


def reference_forward(x, alpha, gamma, beta, epsilon=1e-5):
    ssq = jnp.sum(x * x, axis=(0, 1), keepdims=True)               # [1,1,H,W]
    embedding = jnp.sqrt(ssq + epsilon) * alpha                     # [1,C,H,W]
    norm = gamma / jnp.sqrt(
        jnp.mean(embedding * embedding, axis=1, keepdims=True) + epsilon)
    gate = 1.0 + jnp.tanh(embedding * norm + beta)                  # [1,C,H,W]
    return x * gate


if __name__ == "__main__":
    key = jax.random.PRNGKey(0)

    # Small shapes consistent with the module: NCHW feature map.
    B, C, H, W = 2, 8, 8, 16
    kx, ka, kg, kb, k2 = jax.random.split(key, 5)
    x = jax.random.normal(kx, (B, C, H, W), jnp.float32)
    # Non-trivial parameters (torch init alpha=1, gamma=beta=0 gives the
    # degenerate gate == 1, which would not exercise the math).
    alpha = 1.0 + 0.1 * jax.random.normal(ka, (1, C, 1, 1), jnp.float32)
    gamma = 0.5 * jax.random.normal(kg, (1, C, 1, 1), jnp.float32)
    beta = 0.1 * jax.random.normal(kb, (1, C, 1, 1), jnp.float32)

    out = gct_forward(x, alpha, gamma, beta)
    jax.block_until_ready(out)
    ref = reference_forward(x, alpha, gamma, beta)
    assert out.shape == x.shape, out.shape
    assert jnp.allclose(out, ref, atol=1e-5, rtol=1e-4), (
        float(jnp.max(jnp.abs(out - ref))))

    # Second check: forces multiple row tiles + row padding (R = 22 -> 24) to
    # exercise the resident-accumulator and padding paths.
    B2, C2 = 2, 11
    x2 = jax.random.normal(k2, (B2, C2, H, W), jnp.float32)
    a2 = 1.0 + 0.1 * jax.random.normal(ka, (1, C2, 1, 1), jnp.float32)
    g2 = 0.5 * jax.random.normal(kg, (1, C2, 1, 1), jnp.float32)
    b2 = 0.1 * jax.random.normal(kb, (1, C2, 1, 1), jnp.float32)
    out2 = gct_forward(x2, a2, g2, b2, row_tile=8)
    jax.block_until_ready(out2)
    ref2 = reference_forward(x2, a2, g2, b2)
    assert jnp.allclose(out2, ref2, atol=1e-5, rtol=1e-4), (
        float(jnp.max(jnp.abs(out2 - ref2))))

    print("KERNEL_OK")
</pallas_src>

<mosaic_0001>
module attributes {stable_mosaic.version = 11 : i64} {
  func.func @_gct_reduce_kernel(%arg0: i32, %arg1: memref<16x128xf32, #tpu.memory_space<vmem>>, %arg2: memref<1x128xf32, #tpu.memory_space<vmem>>) attributes {dimension_semantics = [#tpu.dimension_semantics<arbitrary>], iteration_bounds = array<i64: 1>, scalar_prefetch = 0 : i64, scratch_operands = 0 : i64, tpu.core_type = #tpu.core_type<tc>, window_params = [{transform_indices = @transform_0, window_bounds = array<i64: 16, 128>}, {pipeline_mode = #tpu.pipeline_mode<synchronous>, transform_indices = @transform_1, window_bounds = array<i64: 1, 128>}]} {
    %c0_i32 = arith.constant 0 : i32
    %0 = arith.cmpi eq, %arg0, %c0_i32 : i32
    %1 = arith.extui %0 : i1 to i32
    %c0_i32_0 = arith.constant 0 : i32
    %2 = arith.cmpi ne, %1, %c0_i32_0 : i32
    scf.if %2 {
      %cst_6 = arith.constant 0.000000e+00 : f32
      %10 = vector.broadcast %cst_6 : f32 to vector<1x128xf32>
      %c0_7 = arith.constant 0 : index
      %c0_8 = arith.constant 0 : index
      %11 = vector.load %arg2[%c0_7, %c0_8] : memref<1x128xf32, #tpu.memory_space<vmem>>, vector<1x128xf32>
      tpu.vector_store %arg2[%c0_7, %c0_8], %10 {strides = array<i32>} : memref<1x128xf32, #tpu.memory_space<vmem>>, vector<1x128xf32>,
    } else {
    }
    %c0 = arith.constant 0 : index
    %c0_1 = arith.constant 0 : index
    %3 = vector.load %arg1[%c0, %c0_1] : memref<16x128xf32, #tpu.memory_space<vmem>>, vector<16x128xf32>
    %c0_2 = arith.constant 0 : index
    %c0_3 = arith.constant 0 : index
    %4 = vector.load %arg2[%c0_2, %c0_3] : memref<1x128xf32, #tpu.memory_space<vmem>>, vector<1x128xf32>
    %5 = arith.mulf %3, %3 : vector<16x128xf32>
    %cst = arith.constant dense<0.000000e+00> : vector<128xf32>
    %6 = vector.multi_reduction <add>, %5, %cst [0] : vector<16x128xf32> to vector<128xf32>
    %7 = vector.shape_cast %6 : vector<128xf32> to vector<1x128xf32>
    %8 = arith.addf %4, %7 : vector<1x128xf32>
    %c0_4 = arith.constant 0 : index
    %c0_5 = arith.constant 0 : index
    %9 = vector.load %arg2[%c0_4, %c0_5] : memref<1x128xf32, #tpu.memory_space<vmem>>, vector<1x128xf32>
    tpu.vector_store %arg2[%c0_4, %c0_5], %8 {strides = array<i32>} : memref<1x128xf32, #tpu.memory_space<vmem>>, vector<1x128xf32>,
    return
  }
  func.func @transform_0(%arg0: i32) -> (i32, i32) {
    %c0_i32 = arith.constant 0 : i32
    %c0_i32_0 = arith.constant 0 : i32
    return %arg0, %c0_i32 : i32, i32
  }
  func.func @transform_1(%arg0: i32) -> (i32, i32) {
    %c0_i32 = arith.constant 0 : i32
    %c0_i32_0 = arith.constant 0 : i32
    %c0_i32_1 = arith.constant 0 : i32
    return %c0_i32, %c0_i32_0 : i32, i32
  }
}

</mosaic_0001>

<bundles_post_ra>
// kernel: tpu_custom_call.1
= control target key start
LH: loop header
LB: loop body
LE: loop exit
PB: predicated region body
PF: predicated region fallthrough
CT: control target
= control target key end

     0   :  { %6 = vsyncpa [#allocation3], 0  ;;  %s149_s0 = inlined_call_operand.hbm [shape: f32[16,128], index: 0, kind: input, shape index: {}]   ;;  %s150_s1 = inlined_call_operand.hbm [shape: f32[1,128], index: 1, kind: output, shape index: {}]  }
   0x1   :  { %7 = vsyncpa [#allocation4], 0  ;;  %s110_s6 = smov [#allocation2]   ;;  %s62_s10 = scalar_lea.hbm %s149_s0, 256 }
   0x2   :  { %s13_s7 = sshll.u32 %s110_s6, 4  ;;  %p63_p0 = scmp.ne.s32.totalorder %s149_s0, %s62_s10  ;;  %s14_s7 = int_to_ptr.vmem [resolvable:$true] %s13_s7 }
   0x3   :  { %p66_p1 = scmp.lt.u32.totalorder %s62_s10, %s149_s0 }
   0x5   :  { %p68_p2 = pnand %p66_p1, %p63_p0 }
   0x7   :  { %71 = shalt.err (!%p68_p2)
}
   0x8   :  { %s72_s15 = scalar_lea.vmem %s14_s7, 256  ;;  %p77_p4 = scmp.lt.s32.totalorder %s14_s7, %s14_s7 }
   0x9   :  { %p73_p3 = scmp.ne.s32.totalorder %s14_s7, %s72_s15  ;;  %p78_p5 = scmp.lt.s32.totalorder %s72_s15, %s72_s15 }
   0xb   :  { %p79_p6 = por %p78_p5, %p77_p4 }
   0xd   :  { %p80_p7 = pnand %p79_p6, %p73_p3 }
   0xf   :  { %83 = shalt.err (!%p80_p7)
}
  0x10   :  { %s111_s16 = smov 128   ;;  %s112_s17 = smov 8  }
  0x11   :  { %19 = dma.hbm_to_vmem [thread:$0]  %s149_s0, 256, %s14_s7, [#allocation3], %s111_s16, %s111_s16, %s112_s17  }
  0x12   :  { %106 = dma.done.wait [#allocation3], 256  }
  0x13   :  { %107 = vsyncadd [#allocation3], 4294967040  ;;  %v113_v0 = vmov 0.0   ;;  %v28_v1 = vld [vmem:[#allocation2] sm:$0xff]  ;;  %v29_v2 = vld [vmem:[#allocation2 + $0x8] sm:$0xff]  ;;  %s114_s20 = smov [#allocation5]  }
  0x14   :  { %27 = vst [vmem:[#allocation5] sm:$0x1] %v113_v0  ;;  %v31_v3 = vmul.f32 %v28_v1, %v28_v1  ;;  %v32_v4 = vmul.f32 %v29_v2, %v29_v2  ;;  %s48_s21 = sshll.u32 %s114_s20, 4  ;;  %s49_s21 = int_to_ptr.vmem [resolvable:$true] %s48_s21 }
  0x15   :  { %s84_s0 = scalar_lea.vmem %s49_s21, 16  ;;  %s88_s22 = scalar_lea.vmem %s49_s21, 32 }
  0x16   :  { %v33_v5 = vadd.f32 %v32_v4, %v31_v3  ;;  %p85_p8 = scmp.ne.s32.totalorder %s49_s21, %s84_s0  ;;  %p89_p9 = scmp.lt.s32.totalorder %s49_s21, %s49_s21 }
  0x17   :  { %p90_p10 = scmp.lt.s32.totalorder %s88_s22, %s84_s0 }
  0x18   :  { %v34_v6 = vrot.slane %v33_v5, 4 }
  0x19   :  { %p91_p11 = por %p90_p10, %p89_p9 }
  0x1a   :  { %v35_v7 = vadd.f32 %v34_v6, %v33_v5 }
  0x1b   :  { %v30_v11 = vld [vmem:[#allocation5] sm:$0x1]  ;;  %p92_p12 = pnand %p91_p11, %p85_p8 }
  0x1c   :  { %v36_v8 = vrot.slane %v35_v7, 2 }
  0x1e   :  { %v37_v9 = vadd.f32 %v36_v8, %v35_v7 }
  0x20   :  { %v38_v10 = vrot.slane %v37_v9, 1 }
  0x22   :  { %v39_v12 = vadd.f32 %v38_v10, %v37_v9 }
  0x24   :  { %v40_v13 = vadd.f32 %v39_v12, %v30_v11 }
  0x26   :  { %41 = vst [vmem:[#allocation5] sm:$0x1] %v40_v13 }
  0x27   :  { %95 = shalt.err (!%p92_p12)
}
  0x28   :  { %s96_s25 = scalar_lea.hbm %s150_s1, 16 }
  0x29   :  { %p97_p13 = scmp.ne.s32.totalorder %s150_s1, %s96_s25  ;;  %p100_p0 = scmp.lt.u32.totalorder %s96_s25, %s150_s1 }
  0x2b   :  { %p102_p1 = pnand %p100_p0, %p97_p13 }
  0x2d   :  { %105 = shalt.err (!%p102_p1)
}
  0x2e   :  { %51 = dma.vmem_to_hbm [thread:$0]  %s49_s21, 16, %s150_s1, [#allocation4]  }
  0x2f   :  { %108 = dma.done.wait [#allocation4], 16  }
  0x30   :  { %109 = vsyncadd [#allocation4], 4294967280 }
  0x31   :  { %55 = vsyncpa [#allocation3], 1 }
  0x32   :  { %56 = vsyncpa [#allocation4], 1 }

</bundles_post_ra>
